<compile_context>
chip_gen: v7x
topology: tpu7x:2x2x1
jax: 0.10.0
libtpu: 0.0.40
codegen_flags: <defaults>
</compile_context>

<pallas_src>
import jax
import jax.numpy as jnp
from jax.experimental import pallas as pl
from jax.experimental.pallas import tpu as pltpu

EPS = 0.003


def _critic_kernel(sa_ref,      # (din, TB)  bf16  [state; action] columns = batch
                   w_in_ref,    # (384, din) bf16  fused fcs1/fca1 weight, [out, in]
                   ws2_ref,     # (128, 256) bf16  fcs2 weight, [out, in]
                   w2_ref,      # (128, 256) bf16  fc2 weight (unsplit), [out, in]
                   pack_ref,    # (768, 1)   f32   [b_in(384); bs2(128); b2(128); fc3.w(128)]
                   b3_ref,      # (1,)       f32   fc3 bias (SMEM scalar)
                   out_ref):    # (1, TB)    f32   lane-dense Q row
    b_in = pack_ref[0:384, :]      # (384, 1)
    bs2 = pack_ref[384:512, :]     # (128, 1)
    b2 = pack_ref[512:640, :]      # (128, 1)
    w3 = pack_ref[640:768, :]      # (128, 1)  fc3 weight as a column (f32)

    # Fused fcs1 / fca1 (block-diagonal weight): rows 0:256 -> s1, rows 256:384 -> a1.
    h = jnp.dot(w_in_ref[...], sa_ref[...], preferred_element_type=jnp.float32) + b_in
    h = jnp.maximum(h, 0.0).astype(jnp.bfloat16)          # relu + single bf16 cast
    s1 = h[:256, :]
    a1 = h[256:, :]

    # s2 = relu(fcs2(s1))
    s2 = jnp.maximum(
        jnp.dot(ws2_ref[...], s1, preferred_element_type=jnp.float32) + bs2,
        0.0).astype(jnp.bfloat16)

    # x = relu(fc2(cat(s2, a1)))  ->  one K=256 matmul (sublane concat of the two halves).
    x_in = jnp.concatenate([s2, a1], axis=0)               # (256, TB) bf16
    x = jnp.maximum(
        jnp.dot(w2_ref[...], x_in, preferred_element_type=jnp.float32) + b2,
        0.0)                                               # (128, TB) f32

    # q = fc3(x): VPU multiply + sublane reduce -> lane-dense (1, TB) row; f32 head.
    out_ref[...] = jnp.sum(x * w3, axis=0, keepdims=True) + b3_ref[0]


def critic_forward(state, action, params, tb=512):
    """state: [n, state_dim] f32, action: [n, action_dim] f32 -> [n, 1] f32."""
    n, sd = state.shape
    ad = action.shape[1]
    din = sd + ad
    w_in, ws2, w2, pack, b3 = params

    # Batch-on-lanes: concat + transpose once in the wrapper; bf16 halves input DMA.
    sa_t = jnp.concatenate([state, action], axis=1).astype(jnp.bfloat16).T   # (din, n)

    # Batch tile (lane dim): multiple of 128, large enough to amortize per-step grid
    # overhead, and >= 2 grid steps whenever the batch allows it so the parallel axis
    # can shard across both v7x TensorCores.
    # TODO(synk): if plain "parallel" does not shard across v7x cores, use CORE_PARALLEL.
    n128 = ((n + 127) // 128) * 128
    if n128 <= 128:
        TB = 128
    elif n128 < 2 * tb:
        TB = ((n128 // 2 + 127) // 128) * 128   # ~half the batch -> grid of 2
    else:
        TB = tb
    n_pad = ((n + TB - 1) // TB) * TB
    if n_pad != n:
        sa_t = jnp.pad(sa_t, ((0, 0), (0, n_pad - n)))
    grid = (n_pad // TB,)

    flops = 2 * n_pad * (din * 384 + 256 * 128 + 256 * 128 + 128)
    weight_bytes = sum(int(p.size) * p.dtype.itemsize for p in (w_in, ws2, w2, pack, b3))
    bytes_accessed = weight_bytes + n_pad * (din * 2 + 4)

    out = pl.pallas_call(
        _critic_kernel,
        out_shape=jax.ShapeDtypeStruct((1, n_pad), jnp.float32),
        grid=grid,
        in_specs=[
            pl.BlockSpec((din, TB), lambda i: (0, i)),          # streamed activations
            pl.BlockSpec(w_in.shape, lambda i: (0, 0)),         # VMEM-resident weights
            pl.BlockSpec(ws2.shape, lambda i: (0, 0)),
            pl.BlockSpec(w2.shape, lambda i: (0, 0)),
            pl.BlockSpec(pack.shape, lambda i: (0, 0)),         # packed biases + fc3 row
            pl.BlockSpec(memory_space=pltpu.MemorySpace.SMEM),  # fc3 bias scalar
        ],
        out_specs=pl.BlockSpec((1, TB), lambda i: (0, i)),      # lane-dense Q row
        compiler_params=pltpu.CompilerParams(
            dimension_semantics=("parallel",)),                 # batch tiles independent
        cost_estimate=pl.CostEstimate(
            flops=flops, transcendentals=0, bytes_accessed=bytes_accessed),
    )(sa_t, w_in, ws2, w2, pack, b3)

    return out[0, :n].reshape(n, 1)


def init_critic_params(key, state_dim, action_dim):
    """Deterministic init mirroring nn.Linear defaults (+ fc3 weight uniform(-EPS, EPS)).

    Weights are kept in PyTorch-native [out, in] layout (the kernel computes W @ x),
    stored in bf16 for the MXU; all small f32 vectors are packed into one column.
    """
    def linear(key, fan_in, fan_out, w_bound=None):
        kw, kb = jax.random.split(key)
        bound = float(fan_in) ** -0.5
        wb = bound if w_bound is None else w_bound
        w = jax.random.uniform(kw, (fan_out, fan_in), jnp.float32, -wb, wb)   # [out, in]
        b = jax.random.uniform(kb, (fan_out,), jnp.float32, -bound, bound)
        return w, b

    k1, k2, k3, k4, k5 = jax.random.split(key, 5)
    ws1, bs1 = linear(k1, state_dim, 256)        # fcs1
    ws2, bs2 = linear(k2, 256, 128)              # fcs2
    wa1, ba1 = linear(k3, action_dim, 128)       # fca1
    w2, b2 = linear(k4, 256, 128)                # fc2
    w3, b3 = linear(k5, 128, 1, w_bound=EPS)     # fc3.weight ~ U(-EPS, EPS)

    din = state_dim + action_dim
    # Fuse fcs1 / fca1 block-diagonally: [state; action] columns -> [s1; a1] rows.
    w_in = jnp.zeros((384, din), jnp.float32)
    w_in = w_in.at[:256, :state_dim].set(ws1)
    w_in = w_in.at[256:, state_dim:].set(wa1)

    # Packed f32 column: [b_in(384); bs2(128); b2(128); fc3.weight(128)] -> (768, 1).
    pack = jnp.concatenate([bs1, ba1, bs2, b2, w3[0]]).reshape(768, 1)

    return (w_in.astype(jnp.bfloat16),
            ws2.astype(jnp.bfloat16),
            w2.astype(jnp.bfloat16),
            pack,
            b3)            # fc3.bias, shape (1,), f32 (SMEM scalar)


def critic_reference(state, action, params):
    """Pure-JAX reference mirroring the kernel arithmetic (bf16 matmuls, f32 accumulate)."""
    w_in, ws2, w2, pack, b3 = params
    b_in = pack[0:384, 0]
    bs2_b = pack[384:512, 0]
    b2_b = pack[512:640, 0]
    w3 = pack[640:768, 0]
    sa = jnp.concatenate([state, action], axis=1).astype(jnp.bfloat16)
    h = jnp.maximum(
        jnp.dot(sa, w_in.T, preferred_element_type=jnp.float32) + b_in, 0.0
    ).astype(jnp.bfloat16)
    s1, a1 = h[:, :256], h[:, 256:]
    s2 = jnp.maximum(
        jnp.dot(s1, ws2.T, preferred_element_type=jnp.float32) + bs2_b, 0.0
    ).astype(jnp.bfloat16)
    x = jnp.maximum(
        jnp.dot(jnp.concatenate([s2, a1], axis=1), w2.T,
                preferred_element_type=jnp.float32) + b2_b, 0.0)
    return jnp.sum(x * w3, axis=-1, keepdims=True) + b3[0]


if __name__ == "__main__":
    state_dim, action_dim, batch = 32, 8, 4

    key = jax.random.PRNGKey(0)
    k_params, k_state, k_action = jax.random.split(key, 3)

    params = init_critic_params(k_params, state_dim, action_dim)
    state = jax.random.normal(k_state, (batch, state_dim), jnp.float32)
    action = jax.random.normal(k_action, (batch, action_dim), jnp.float32)

    q = critic_forward(state, action, params)
    q = jax.block_until_ready(q)

    q_ref = critic_reference(state, action, params)
    assert q.shape == (batch, 1), q.shape
    assert jnp.allclose(q, q_ref, atol=1e-3, rtol=1e-3), (q, q_ref)

    print("KERNEL_OK")
</pallas_src>

<mosaic_0001>
module attributes {stable_mosaic.version = 11 : i64} {
  func.func @_critic_kernel(%arg0: i32, %arg1: memref<40x128xbf16, #tpu.memory_space<vmem>>, %arg2: memref<384x40xbf16, #tpu.memory_space<vmem>>, %arg3: memref<128x256xbf16, #tpu.memory_space<vmem>>, %arg4: memref<128x256xbf16, #tpu.memory_space<vmem>>, %arg5: memref<768x1xf32, #tpu.memory_space<vmem>>, %arg6: memref<1xf32, #tpu.memory_space<smem>>, %arg7: memref<1x128xf32, #tpu.memory_space<vmem>>) attributes {dimension_semantics = [#tpu.dimension_semantics<parallel>], iteration_bounds = array<i64: 1>, scalar_prefetch = 0 : i64, scratch_operands = 0 : i64, tpu.core_type = #tpu.core_type<tc>, window_params = [{transform_indices = @transform_0, window_bounds = array<i64: 40, 128>}, {pipeline_mode = #tpu.pipeline_mode<synchronous>, transform_indices = @transform_1, window_bounds = array<i64: 384, 40>}, {pipeline_mode = #tpu.pipeline_mode<synchronous>, transform_indices = @transform_2, window_bounds = array<i64: 128, 256>}, {pipeline_mode = #tpu.pipeline_mode<synchronous>, transform_indices = @transform_3, window_bounds = array<i64: 128, 256>}, {pipeline_mode = #tpu.pipeline_mode<synchronous>, transform_indices = @transform_4, window_bounds = array<i64: 768, 1>}, {transform_indices = @transform_5, window_bounds = array<i64: 1>}, {transform_indices = @transform_6, window_bounds = array<i64: 1, 128>}]} {
    %c0 = arith.constant 0 : index
    %c0_0 = arith.constant 0 : index
    %0 = vector.load %arg5[%c0, %c0_0] : memref<768x1xf32, #tpu.memory_space<vmem>>, vector<384x1xf32>
    %c384 = arith.constant 384 : index
    %c0_1 = arith.constant 0 : index
    %1 = vector.load %arg5[%c384, %c0_1] : memref<768x1xf32, #tpu.memory_space<vmem>>, vector<128x1xf32>
    %c512 = arith.constant 512 : index
    %c0_2 = arith.constant 0 : index
    %2 = vector.load %arg5[%c512, %c0_2] : memref<768x1xf32, #tpu.memory_space<vmem>>, vector<128x1xf32>
    %c640 = arith.constant 640 : index
    %c0_3 = arith.constant 0 : index
    %3 = vector.load %arg5[%c640, %c0_3] : memref<768x1xf32, #tpu.memory_space<vmem>>, vector<128x1xf32>
    %c0_4 = arith.constant 0 : index
    %c0_5 = arith.constant 0 : index
    %4 = vector.load %arg2[%c0_4, %c0_5] : memref<384x40xbf16, #tpu.memory_space<vmem>>, vector<384x40xbf16>
    %c0_6 = arith.constant 0 : index
    %c0_7 = arith.constant 0 : index
    %5 = vector.load %arg1[%c0_6, %c0_7] : memref<40x128xbf16, #tpu.memory_space<vmem>>, vector<40x128xbf16>
    %cst = arith.constant dense<0.000000e+00> : vector<384x128xf32>
    %6 = tpu.matmul %4, %5, %cst {dimension_numbers = #tpu.dot_dimension_numbers<[1], [0], [0], [1], [0, 0, 1, 1], [], []>} : vector<384x40xbf16>, vector<40x128xbf16>, vector<384x128xf32> -> vector<384x128xf32>
    %7 = vector.broadcast %0 : vector<384x1xf32> to vector<384x128xf32>
    %8 = arith.addf %6, %7 : vector<384x128xf32>
    %cst_8 = arith.constant 0.000000e+00 : f32
    %9 = vector.broadcast %cst_8 : f32 to vector<384x128xf32>
    %10 = arith.maximumf %8, %9 : vector<384x128xf32>
    %11 = arith.truncf %10 : vector<384x128xf32> to vector<384x128xbf16>
    %12 = vector.extract_strided_slice %11 {offsets = [0, 0], sizes = [256, 128], strides = [1, 1]} : vector<384x128xbf16> to vector<256x128xbf16>
    %13 = vector.extract_strided_slice %11 {offsets = [256, 0], sizes = [128, 128], strides = [1, 1]} : vector<384x128xbf16> to vector<128x128xbf16>
    %c0_9 = arith.constant 0 : index
    %c0_10 = arith.constant 0 : index
    %14 = vector.load %arg3[%c0_9, %c0_10] : memref<128x256xbf16, #tpu.memory_space<vmem>>, vector<128x256xbf16>
    %cst_11 = arith.constant dense<0.000000e+00> : vector<128x128xf32>
    %15 = tpu.matmul %14, %12, %cst_11 {dimension_numbers = #tpu.dot_dimension_numbers<[1], [0], [0], [1], [0, 0, 1, 1], [], []>} : vector<128x256xbf16>, vector<256x128xbf16>, vector<128x128xf32> -> vector<128x128xf32>
    %16 = vector.broadcast %1 : vector<128x1xf32> to vector<128x128xf32>
    %17 = arith.addf %15, %16 : vector<128x128xf32>
    %cst_12 = arith.constant 0.000000e+00 : f32
    %18 = vector.broadcast %cst_12 : f32 to vector<128x128xf32>
    %19 = arith.maximumf %17, %18 : vector<128x128xf32>
    %20 = arith.truncf %19 : vector<128x128xf32> to vector<128x128xbf16>
    %21 = tpu.concatenate %20, %13 in 0 : vector<128x128xbf16>, vector<128x128xbf16> -> vector<256x128xbf16>
    %c0_13 = arith.constant 0 : index
    %c0_14 = arith.constant 0 : index
    %22 = vector.load %arg4[%c0_13, %c0_14] : memref<128x256xbf16, #tpu.memory_space<vmem>>, vector<128x256xbf16>
    %cst_15 = arith.constant dense<0.000000e+00> : vector<128x128xf32>
    %23 = tpu.matmul %22, %21, %cst_15 {dimension_numbers = #tpu.dot_dimension_numbers<[1], [0], [0], [1], [0, 0, 1, 1], [], []>} : vector<128x256xbf16>, vector<256x128xbf16>, vector<128x128xf32> -> vector<128x128xf32>
    %24 = vector.broadcast %2 : vector<128x1xf32> to vector<128x128xf32>
    %25 = arith.addf %23, %24 : vector<128x128xf32>
    %cst_16 = arith.constant 0.000000e+00 : f32
    %26 = vector.broadcast %cst_16 : f32 to vector<128x128xf32>
    %27 = arith.maximumf %25, %26 : vector<128x128xf32>
    %28 = vector.broadcast %3 : vector<128x1xf32> to vector<128x128xf32>
    %29 = arith.mulf %27, %28 : vector<128x128xf32>
    %cst_17 = arith.constant dense<0.000000e+00> : vector<128xf32>
    %30 = vector.multi_reduction <add>, %29, %cst_17 [0] : vector<128x128xf32> to vector<128xf32>
    %31 = vector.shape_cast %30 : vector<128xf32> to vector<1x128xf32>
    %c0_18 = arith.constant 0 : index
    %32 = memref.load %arg6[%c0_18] : memref<1xf32, #tpu.memory_space<smem>>
    %33 = vector.broadcast %32 : f32 to vector<1x128xf32>
    %34 = arith.addf %31, %33 : vector<1x128xf32>
    %c0_19 = arith.constant 0 : index
    %c0_20 = arith.constant 0 : index
    %35 = vector.load %arg7[%c0_19, %c0_20] : memref<1x128xf32, #tpu.memory_space<vmem>>, vector<1x128xf32>
    tpu.vector_store %arg7[%c0_19, %c0_20], %34 {strides = array<i32>} : memref<1x128xf32, #tpu.memory_space<vmem>>, vector<1x128xf32>,
    return
  }
  func.func @transform_0(%arg0: i32) -> (i32, i32) {
    %c0_i32 = arith.constant 0 : i32
    %c0_i32_0 = arith.constant 0 : i32
    return %c0_i32, %arg0 : i32, i32
  }
  func.func @transform_1(%arg0: i32) -> (i32, i32) {
    %c0_i32 = arith.constant 0 : i32
    %c0_i32_0 = arith.constant 0 : i32
    %c0_i32_1 = arith.constant 0 : i32
    return %c0_i32, %c0_i32_0 : i32, i32
  }
  func.func @transform_2(%arg0: i32) -> (i32, i32) {
    %c0_i32 = arith.constant 0 : i32
    %c0_i32_0 = arith.constant 0 : i32
    %c0_i32_1 = arith.constant 0 : i32
    return %c0_i32, %c0_i32_0 : i32, i32
  }
  func.func @transform_3(%arg0: i32) -> (i32, i32) {
    %c0_i32 = arith.constant 0 : i32
    %c0_i32_0 = arith.constant 0 : i32
    %c0_i32_1 = arith.constant 0 : i32
    return %c0_i32, %c0_i32_0 : i32, i32
  }
  func.func @transform_4(%arg0: i32) -> (i32, i32) {
    %c0_i32 = arith.constant 0 : i32
    %c0_i32_0 = arith.constant 0 : i32
    %c0_i32_1 = arith.constant 0 : i32
    return %c0_i32, %c0_i32_0 : i32, i32
  }
  func.func @transform_5(%arg0: i32) -> i32 {
    %c0_i32 = arith.constant 0 : i32
    %c0_i32_0 = arith.constant 0 : i32
    return %c0_i32 : i32
  }
  func.func @transform_6(%arg0: i32) -> (i32, i32) {
    %c0_i32 = arith.constant 0 : i32
    %c0_i32_0 = arith.constant 0 : i32
    return %c0_i32, %arg0 : i32, i32
  }
}

</mosaic_0001>

<bundles_post_ra>
// kernel: tpu_custom_call.1
= control target key start
LH: loop header
LB: loop body
LE: loop exit
PB: predicated region body
PF: predicated region fallthrough
CT: control target
= control target key end

     0   :  { %v2057_v2 = vmov 0   ;;  %vm550_vm0 = vcmask 326656   ;;  %vm623_vm1 = vcmask 1043456   ;;  %s2792_s0 = inlined_call_operand.vmem [shape: bf16[40,128], index: 0, kind: input, shape index: {}]   ;;  %s2793_s1 = inlined_call_operand.vmem [shape: bf16[384,40], index: 1, kind: input, shape index: {}]   ;;  %s2794_s2 = inlined_call_operand.vmem [shape: bf16[128,256], index: 2, kind: input, shape index: {}]   ;;  %s2795_s3 = inlined_call_operand.vmem [shape: bf16[128,256], index: 3, kind: input, shape index: {}]   ;;  %s2796_s4 = inlined_call_operand.vmem [shape: f32[768,1], index: 4, kind: input, shape index: {}]   ;;  %s2797_s5 = inlined_call_operand.<no memory space> [shape: f32[1], index: 5, kind: input, shape index: {}]   ;;  %s2798_s6 = inlined_call_operand.hbm [shape: f32[1,128], index: 6, kind: output, shape index: {}]  }
   0x1   :  { %v42_v0 = vld [vmem:[%s2796_s4 + $0x80] sm:$0xff]  ;;  %1957 = vset.pattern.permute.xlu1 %v2057_v2  ;;  %1956 = vset.pattern.permute.xlu0 %v2057_v2  ;;  %v43_v4 = vld [vmem:[%s2796_s4 + $0x88] sm:$0xff]  ;;  %v1960_v7 = vld [vmem:[%s2792_s0 + $0x10] ss:$0 sps:$4 sm:$0xff]  }
   0x2   :  { %v26_v1 = vld [vmem:[%s2796_s4] sm:$0xff]  ;;  %257 = vperm.xlu0 %1956, %v42_v0   ;;  %v27_v5 = vld [vmem:[%s2796_s4 + $0x8] sm:$0xff]  ;;  %v44_v9 = vld [vmem:[%s2796_s4 + $0x90] sm:$0xff]  ;;  %v625_v11 = vsel %vm623_vm1, %v1960_v7, 0 }
   0x3   :  { %v1958_v3 = vld [vmem:[%s2792_s0] sm:$0xff]   ;;  %177 = vperm.xlu1 %1957, %v26_v1   ;;  %v1959_v6 = vld [vmem:[%s2792_s0 + $0x8] sm:$0xff]   ;;  %v45_v10 = vld [vmem:[%s2796_s4 + $0x98] sm:$0xff] }
   0x4   :  { %1883 = vmatprep.subr.bf16.mxu0 %v1958_v3  ;;  %v1961_v8 = vld [vmem:[%s2793_s1] sm:$0xff]   ;;  %v28_v12 = vld [vmem:[%s2796_s4 + $0x10] sm:$0xff]  ;;  %v29_v13 = vld [vmem:[%s2796_s4 + $0x18] sm:$0xff] }
   0x5   :  { %1884 = vmatpush3.bf16.msra.mxu0 %v1958_v3  ;;  %1889 = vmatprep.mubr.msk.bf16.mxu0 %vm550_vm0, %v1961_v8  ;;  %v1962_v14 = vld [vmem:[%s2793_s1 + $0x8] sm:$0xff]   ;;  %v1963_v15 = vld [vmem:[%s2793_s1 + $0x10] sm:$0xff]   ;;  %v46_v16 = vld [vmem:[%s2796_s4 + $0xa0] sm:$0xff] }
   0x6   :  { %1885 = vmatprep.subr.bf16.mxu0 %v1959_v6  ;;  %262 = vperm.xlu0 %1956, %v43_v4   ;;  %v47_v17 = vld [vmem:[%s2796_s4 + $0xa8] sm:$0xff]  ;;  %v30_v18 = vld [vmem:[%s2796_s4 + $0x20] sm:$0xff]  ;;  %v1964_v20 = vld [vmem:[%s2793_s1 + $0x18] sm:$0xff]  }
   0x7   :  { %182 = vperm.xlu1 %1957, %v27_v5   ;;  %v31_v19 = vld [vmem:[%s2796_s4 + $0x28] sm:$0xff]  ;;  %v1965_v21 = vld [vmem:[%s2793_s1 + $0x20] sm:$0xff]   ;;  %v48_v22 = vld [vmem:[%s2796_s4 + $0xb0] sm:$0xff] }
   0x8   :  { %v49_v23 = vld [vmem:[%s2796_s4 + $0xb8] sm:$0xff]  ;;  %v32_v24 = vld [vmem:[%s2796_s4 + $0x30] sm:$0xff]  ;;  %v1966_v26 = vld [vmem:[%s2793_s1 + $0x28] sm:$0xff]  }
   0x9   :  { %1886 = vmatpush3.bf16.msra.mxu0 %v1959_v6  ;;  %v33_v25 = vld [vmem:[%s2796_s4 + $0x38] sm:$0xff]  ;;  %v1967_v27 = vld [vmem:[%s2793_s1 + $0x30] sm:$0xff]   ;;  %v50_v28 = vld [vmem:[%s2796_s4 + $0xc0] sm:$0xff] }
   0xa   :  { %1953 = vmatprep.subr.msk.bf16.mxu0 %vm623_vm1, %v1960_v7  ;;  %267 = vperm.xlu0 %1956, %v44_v9   ;;  %v51_v29 = vld [vmem:[%s2796_s4 + $0xc8] sm:$0xff]  ;;  %v34_v30 = vld [vmem:[%s2796_s4 + $0x40] sm:$0xff]  ;;  %v1968_v32 = vld [vmem:[%s2793_s1 + $0x38] sm:$0xff]  }
   0xb   :  { %272 = vperm.xlu1 %1957, %v45_v10   ;;  %v35_v31 = vld [vmem:[%s2796_s4 + $0x48] sm:$0xff]  ;;  %v1969_v33 = vld [vmem:[%s2793_s1 + $0x40] sm:$0xff]   ;;  %v52_v34 = vld [vmem:[%s2796_s4 + $0xd0] sm:$0xff] }
   0xc   :  { %v53_v35 = vld [vmem:[%s2796_s4 + $0xd8] sm:$0xff]  ;;  %v36_v36 = vld [vmem:[%s2796_s4 + $0x50] sm:$0xff]  ;;  %v1970_v38 = vld [vmem:[%s2793_s1 + $0x48] sm:$0xff]  }
   0xd   :  { %1888 = vmatpush3.bf16.msra.mxu0 %v625_v11  ;;  %v37_v37 = vld [vmem:[%s2796_s4 + $0x58] sm:$0xff]  ;;  %v1971_v39 = vld [vmem:[%s2793_s1 + $0x50] sm:$0xff]   ;;  %v54_v40 = vld [vmem:[%s2796_s4 + $0xe0] sm:$0xff] }
   0xe   :  { %187 = vperm.xlu0 %1956, %v28_v12   ;;  %v55_v41 = vld [vmem:[%s2796_s4 + $0xe8] sm:$0xff]  ;;  %v38_v42 = vld [vmem:[%s2796_s4 + $0x60] sm:$0xff]  ;;  %v1972_v44 = vld [vmem:[%s2793_s1 + $0x58] sm:$0xff]  }
   0xf   :  { %192 = vperm.xlu1 %1957, %v29_v13   ;;  %v39_v43 = vld [vmem:[%s2796_s4 + $0x68] sm:$0xff]  ;;  %v1973_v45 = vld [vmem:[%s2793_s1 + $0x60] sm:$0xff]   ;;  %v56_v46 = vld [vmem:[%s2796_s4 + $0xf0] sm:$0xff] }
  0x10   :  { %1890 = vmatmul.mubr.msk.bf16.vlgmr.msra.gmra.mrb[0].mxu0 %vm550_vm0, %v1962_v14  ;;  %v57_v47 = vld [vmem:[%s2796_s4 + $0xf8] sm:$0xff]  ;;  %v40_v48 = vld [vmem:[%s2796_s4 + $0x70] sm:$0xff]  ;;  %v1974_v50 = vld [vmem:[%s2793_s1 + $0x68] sm:$0xff]  }
  0x11   :  { %1893 = vmatprep.mubr.msk.bf16.mxu0 %vm550_vm0, %v1963_v15  ;;  %v41_v49 = vld [vmem:[%s2796_s4 + $0x78] sm:$0xff]  ;;  %v1975_v51 = vld [vmem:[%s2793_s1 + $0x70] sm:$0xff]   ;;  %v58_v52 = vld [vmem:[%s2796_s4 + $0x100] sm:$0xff] }
  0x12   :  { %277 = vperm.xlu0 %1956, %v46_v16   ;;  %v59_v53 = vld [vmem:[%s2796_s4 + $0x108] sm:$0xff]  ;;  %v74_v54 = vld [vmem:[%s2796_s4 + $0x180] sm:$0xff]  ;;  %v1976_v56 = vld [vmem:[%s2793_s1 + $0x78] sm:$0xff]  }
  0x13   :  { %282 = vperm.xlu1 %1957, %v47_v17   ;;  %v75_v55 = vld [vmem:[%s2796_s4 + $0x188] sm:$0xff]  ;;  %v1977_v57 = vld [vmem:[%s2793_s1 + $0x80] sm:$0xff]  }
  0x16   :  { %197 = vperm.xlu0 %1956, %v30_v18  }
  0x17   :  { %202 = vperm.xlu1 %1957, %v31_v19  }
  0x18   :  { %1894 = vmatmul.mubr.msk.bf16.gmra.mrb[4].mxu0 %vm550_vm0, %v1964_v20 }
  0x19   :  { %1897 = vmatprep.mubr.msk.bf16.mxu0 %vm550_vm0, %v1965_v21 }
  0x1a   :  { %287 = vperm.xlu0 %1956, %v48_v22  }
  0x1b   :  { %292 = vperm.xlu1 %1957, %v49_v23  }
  0x1e   :  { %207 = vperm.xlu0 %1956, %v32_v24  }
  0x1f   :  { %212 = vperm.xlu1 %1957, %v33_v25  }
  0x20   :  { %1898 = vmatmul.mubr.msk.bf16.gmra.mrb[8].mxu0 %vm550_vm0, %v1966_v26 }
  0x21   :  { %1901 = vmatprep.mubr.msk.bf16.mxu0 %vm550_vm0, %v1967_v27 }
  0x22   :  { %297 = vperm.xlu0 %1956, %v50_v28  }
  0x23   :  { %302 = vperm.xlu1 %1957, %v51_v29  }
  0x26   :  { %217 = vperm.xlu0 %1956, %v34_v30  }
  0x27   :  { %222 = vperm.xlu1 %1957, %v35_v31  }
  0x28   :  { %1902 = vmatmul.mubr.msk.bf16.gmra.mrb[12].mxu0 %vm550_vm0, %v1968_v32 }
  0x29   :  { %1905 = vmatprep.mubr.msk.bf16.mxu0 %vm550_vm0, %v1969_v33 }
  0x2a   :  { %307 = vperm.xlu0 %1956, %v52_v34  }
  0x2b   :  { %312 = vperm.xlu1 %1957, %v53_v35  }
  0x2e   :  { %227 = vperm.xlu0 %1956, %v36_v36  }
  0x2f   :  { %232 = vperm.xlu1 %1957, %v37_v37  }
  0x30   :  { %1906 = vmatmul.mubr.msk.bf16.gmra.mrb[16].mxu0 %vm550_vm0, %v1970_v38 }
  0x31   :  { %1909 = vmatprep.mubr.msk.bf16.mxu0 %vm550_vm0, %v1971_v39 }
  0x32   :  { %317 = vperm.xlu0 %1956, %v54_v40  }
  0x33   :  { %322 = vperm.xlu1 %1957, %v55_v41  }
  0x36   :  { %237 = vperm.xlu0 %1956, %v38_v42  }
  0x37   :  { %242 = vperm.xlu1 %1957, %v39_v43  }
  0x38   :  { %1910 = vmatmul.mubr.msk.bf16.gmra.mrb[20].mxu0 %vm550_vm0, %v1972_v44 }
  0x39   :  { %1913 = vmatprep.mubr.msk.bf16.mxu0 %vm550_vm0, %v1973_v45 }
  0x3a   :  { %327 = vperm.xlu0 %1956, %v56_v46  }
  0x3b   :  { %332 = vperm.xlu1 %1957, %v57_v47  }
  0x3e   :  { %247 = vperm.xlu0 %1956, %v40_v48  }
  0x3f   :  { %252 = vperm.xlu1 %1957, %v41_v49  }
  0x40   :  { %1914 = vmatmul.mubr.msk.bf16.gmra.mrb[24].mxu0 %vm550_vm0, %v1974_v50 }
  0x41   :  { %1917 = vmatprep.mubr.msk.bf16.mxu0 %vm550_vm0, %v1975_v51 }
  0x42   :  { %337 = vperm.xlu0 %1956, %v58_v52  }
  0x43   :  { %342 = vperm.xlu1 %1957, %v59_v53  }
  0x44   :  { %12 = vsyncpa [#allocation4], 0  ;;  %v60_v58 = vld [vmem:[%s2796_s4 + $0x110] sm:$0xff]  ;;  %v61_v59 = vld [vmem:[%s2796_s4 + $0x118] sm:$0xff]  ;;  %s2058_s21 = smov [#allocation3]  }
  0x45   :  { %v76_v60 = vld [vmem:[%s2796_s4 + $0x190] sm:$0xff]  ;;  %v77_v61 = vld [vmem:[%s2796_s4 + $0x198] sm:$0xff]  ;;  %v1978_v62 = vld [vmem:[%s2793_s1 + $0x88] sm:$0xff]   ;;  %s1637_s22 = sshll.u32 %s2058_s21, 4  ;;  %s1638_s22 = int_to_ptr.vmem [resolvable:$true] %s1637_s22 }
  0x46   :  { %942 = vperm.xlu0 %1956, %v74_v54   ;;  %v1979_v63 = vld [vmem:[%s2793_s1 + $0x90] sm:$0xff]   ;;  %v62_v0 = vld [vmem:[%s2796_s4 + $0x120] sm:$0xff]  ;;  %v63_v1 = vld [vmem:[%s2796_s4 + $0x128] sm:$0xff]  ;;  %s2033_s23 = scalar_lea.vmem %s1638_s22, 16  ;;  %s2037_s24 = scalar_lea.vmem %s1638_s22, 32 }
  0x47   :  { %947 = vperm.xlu1 %1957, %v75_v55   ;;  %v78_v2 = vld [vmem:[%s2796_s4 + $0x1a0] sm:$0xff]  ;;  %v79_v3 = vld [vmem:[%s2796_s4 + $0x1a8] sm:$0xff]  ;;  %v1980_v4 = vld [vmem:[%s2793_s1 + $0x98] sm:$0xff]   ;;  %p2034_p0 = scmp.ne.s32.totalorder %s1638_s22, %s2033_s23  ;;  %p2038_p1 = scmp.lt.s32.totalorder %s1638_s22, %s1638_s22 }
  0x48   :  { %1918 = vmatmul.mubr.msk.bf16.gmra.mrb[28].mxu0 %vm550_vm0, %v1976_v56  ;;  %v1981_v5 = vld [vmem:[%s2793_s1 + $0xa0] sm:$0xff]   ;;  %v64_v6 = vld [vmem:[%s2796_s4 + $0x130] sm:$0xff]  ;;  %v65_v7 = vld [vmem:[%s2796_s4 + $0x138] sm:$0xff]  ;;  %p2039_p2 = scmp.lt.s32.totalorder %s2037_s24, %s2033_s23 }
  0x49   :  { %1921 = vmatprep.mubr.msk.bf16.mxu0 %vm550_vm0, %v1977_v57  ;;  %v80_v8 = vld [vmem:[%s2796_s4 + $0x1b0] sm:$0xff]  ;;  %v81_v9 = vld [vmem:[%s2796_s4 + $0x1b8] sm:$0xff]  ;;  %v1982_v10 = vld [vmem:[%s2793_s1 + $0xa8] sm:$0xff]  }
  0x4a   :  { %347 = vperm.xlu0 %1956, %v60_v58   ;;  %v1983_v11 = vld [vmem:[%s2793_s1 + $0xb0] sm:$0xff]   ;;  %v66_v12 = vld [vmem:[%s2796_s4 + $0x140] sm:$0xff]  ;;  %v67_v13 = vld [vmem:[%s2796_s4 + $0x148] sm:$0xff]  ;;  %p2040_p3 = por %p2039_p2, %p2038_p1 }
  0x4b   :  { %352 = vperm.xlu1 %1957, %v61_v59   ;;  %v82_v14 = vld [vmem:[%s2796_s4 + $0x1c0] sm:$0xff]  ;;  %v83_v15 = vld [vmem:[%s2796_s4 + $0x1c8] sm:$0xff]  ;;  %v1984_v16 = vld [vmem:[%s2793_s1 + $0xb8] sm:$0xff]  }
  0x4c   :  { %v68_v17 = vld [vmem:[%s2796_s4 + $0x150] sm:$0xff]  ;;  %v69_v18 = vld [vmem:[%s2796_s4 + $0x158] sm:$0xff]  ;;  %v70_v21 = vld [vmem:[%s2796_s4 + $0x160] sm:$0xff]  ;;  %p2041_p4 = pnand %p2040_p3, %p2034_p0 }
  0x4d   :  { %v84_v19 = vld [vmem:[%s2796_s4 + $0x1d0] sm:$0xff]  ;;  %v85_v20 = vld [vmem:[%s2796_s4 + $0x1d8] sm:$0xff]  ;;  %v71_v22 = vld [vmem:[%s2796_s4 + $0x168] sm:$0xff] }
  0x4e   :  { %952 = vperm.xlu0 %1956, %v76_v60   ;;  %v86_v23 = vld [vmem:[%s2796_s4 + $0x1e0] sm:$0xff]  ;;  %v87_v24 = vld [vmem:[%s2796_s4 + $0x1e8] sm:$0xff]  ;;  %v72_v25 = vld [vmem:[%s2796_s4 + $0x170] sm:$0xff] }
  0x4f   :  { %957 = vperm.xlu1 %1957, %v77_v61   ;;  %v73_v26 = vld [vmem:[%s2796_s4 + $0x178] sm:$0xff]  ;;  %v88_v27 = vld [vmem:[%s2796_s4 + $0x1f0] sm:$0xff]  ;;  %v90_v29 = vld [vmem:[%s2796_s4 + $0x200] sm:$0xff] }
  0x50   :  { %1922 = vmatmul.mubr.msk.bf16.gmra.mrb[32].mxu0 %vm550_vm0, %v1978_v62  ;;  %v89_v28 = vld [vmem:[%s2796_s4 + $0x1f8] sm:$0xff]  ;;  %v91_v30 = vld [vmem:[%s2796_s4 + $0x208] sm:$0xff]  ;;  %v92_v31 = vld [vmem:[%s2796_s4 + $0x210] sm:$0xff] }
  0x51   :  { %1925 = vmatprep.mubr.msk.bf16.mxu0 %vm550_vm0, %v1979_v63  ;;  %v93_v32 = vld [vmem:[%s2796_s4 + $0x218] sm:$0xff]  ;;  %v106_v34 = vld [vmem:[%s2796_s4 + $0x280] sm:$0xff]  ;;  %v107_v35 = vld [vmem:[%s2796_s4 + $0x288] sm:$0xff] }
  0x52   :  { %357 = vperm.xlu0 %1956, %v62_v0   ;;  %v94_v37 = vld [vmem:[%s2796_s4 + $0x220] sm:$0xff]  ;;  %v108_v38 = vld [vmem:[%s2796_s4 + $0x290] sm:$0xff]  ;;  %v95_v41 = vld [vmem:[%s2796_s4 + $0x228] sm:$0xff] }
  0x53   :  { %362 = vperm.xlu1 %1957, %v63_v1   ;;  %v109_v42 = vld [vmem:[%s2796_s4 + $0x298] sm:$0xff]  ;;  %v96_v44 = vld [vmem:[%s2796_s4 + $0x230] sm:$0xff]  ;;  %v110_v45 = vld [vmem:[%s2796_s4 + $0x2a0] sm:$0xff] }
  0x54   :  { %v97_v47 = vld [vmem:[%s2796_s4 + $0x238] sm:$0xff]  ;;  %v111_v48 = vld [vmem:[%s2796_s4 + $0x2a8] sm:$0xff]  ;;  %v98_v51 = vld [vmem:[%s2796_s4 + $0x240] sm:$0xff] }
  0x55   :  { %v112_v52 = vld [vmem:[%s2796_s4 + $0x2b0] sm:$0xff]  ;;  %v99_v54 = vld [vmem:[%s2796_s4 + $0x248] sm:$0xff]  ;;  %v113_v55 = vld [vmem:[%s2796_s4 + $0x2b8] sm:$0xff] }
  0x56   :  { %962 = vperm.xlu0 %1956, %v78_v2   ;;  %v100_v57 = vld [vmem:[%s2796_s4 + $0x250] sm:$0xff]  ;;  %v114_v58 = vld [vmem:[%s2796_s4 + $0x2c0] sm:$0xff]  ;;  %v101_v61 = vld [vmem:[%s2796_s4 + $0x258] sm:$0xff] }
  0x57   :  { %967 = vperm.xlu1 %1957, %v79_v3   ;;  %v115_v62 = vld [vmem:[%s2796_s4 + $0x2c8] sm:$0xff]  ;;  %v1990_v0 = vld [vmem:[%s2794_s2 + $0x34] ss:$8 sps:$4 sm:$0xff]   ;;  %v102_v2 = vld [vmem:[%s2796_s4 + $0x260] sm:$0xff] }
  0x58   :  { %1926 = vmatmul.mubr.msk.bf16.gmra.mrb[36].mxu0 %vm550_vm0, %v1980_v4  ;;  %v1987_v63 = vld [vmem:[%s2794_s2 + $0x4] ss:$8 sps:$4 sm:$0xff]   ;;  %v116_v3 = vld [vmem:[%s2796_s4 + $0x2d0] sm:$0xff]  ;;  %1156 = vmatprep.mubr.bf16.mxu1 %v1990_v0 }
  0x59   :  { %1929 = vmatprep.mubr.msk.bf16.mxu0 %vm550_vm0, %v1981_v5  ;;  %v103_v5 = vld [vmem:[%s2796_s4 + $0x268] sm:$0xff] }
  0x5a   :  { %367 = vperm.xlu0 %1956, %v64_v6   ;;  %v117_v6 = vld [vmem:[%s2796_s4 + $0x2d8] sm:$0xff] }
  0x5b   :  { %372 = vperm.xlu1 %1957, %v65_v7  }
  0x5e   :  { %972 = vperm.xlu0 %1956, %v80_v8  }
  0x5f   :  { %977 = vperm.xlu1 %1957, %v81_v9   ;;  %v104_v9 = vld [vmem:[%s2796_s4 + $0x270] sm:$0xff] }
  0x60   :  { %1930 = vmatmul.mubr.msk.bf16.gmra.mrb[40].mxu0 %vm550_vm0, %v1982_v10  ;;  %v118_v10 = vld [vmem:[%s2796_s4 + $0x2e0] sm:$0xff] }
  0x61   :  { %1933 = vmatprep.mubr.msk.bf16.mxu0 %vm550_vm0, %v1983_v11 }
  0x62   :  { %377 = vperm.xlu0 %1956, %v66_v12   ;;  %v105_v12 = vld [vmem:[%s2796_s4 + $0x278] sm:$0xff] }
  0x63   :  { %382 = vperm.xlu1 %1957, %v67_v13   ;;  %v119_v13 = vld [vmem:[%s2796_s4 + $0x2e8] sm:$0xff] }
  0x66   :  { %982 = vperm.xlu0 %1956, %v82_v14  }
  0x67   :  { %987 = vperm.xlu1 %1957, %v83_v15   ;;  %v120_v15 = vld [vmem:[%s2796_s4 + $0x2f0] sm:$0xff] }
  0x68   :  { %1934 = vmatmul.mubr.msk.bf16.gmra.mrb[44].mxu0 %vm550_vm0, %v1984_v16  ;;  %v121_v16 = vld [vmem:[%s2796_s4 + $0x2f8] sm:$0xff] }
  0x69   :  { %1132 = vmatprep.mubr.bf16.mxu0 %v1987_v63 }
  0x6a   :  { %387 = vperm.xlu0 %1956, %v68_v17  }
  0x6b   :  { %392 = vperm.xlu1 %1957, %v69_v18  }
  0x6e   :  { %992 = vperm.xlu0 %1956, %v84_v19  }
  0x6f   :  { %997 = vperm.xlu1 %1957, %v85_v20  }
  0x72   :  { %397 = vperm.xlu0 %1956, %v70_v21  }
  0x73   :  { %402 = vperm.xlu1 %1957, %v71_v22  }
  0x76   :  { %1002 = vperm.xlu0 %1956, %v86_v23  }
  0x77   :  { %1007 = vperm.xlu1 %1957, %v87_v24  }
  0x7a   :  { %407 = vperm.xlu0 %1956, %v72_v25  }
  0x7b   :  { %412 = vperm.xlu1 %1957, %v73_v26  }
  0x7e   :  { %1012 = vperm.xlu0 %1956, %v88_v27  }
  0x7f   :  { %1017 = vperm.xlu1 %1957, %v89_v28  }
  0x81   :  { %v2403_v33 = vpop.permute.xlu0 %257 }
  0x82   :  { %1239 = vperm.xlu0 %1956, %v90_v29   ;;  %v2411_v36 = vpop.permute.xlu1 %177 }
  0x83   :  { %1244 = vperm.xlu1 %1957, %v91_v30  }
  0x85   :  { %v2419_v39 = vpop.permute.xlu0 %262 }
  0x86   :  { %1249 = vperm.xlu0 %1956, %v92_v31   ;;  %v2421_v40 = vpop.permute.xlu1 %182 }
  0x87   :  { %1254 = vperm.xlu1 %1957, %v93_v32  }
  0x89   :  { %v2429_v43 = vpop.permute.xlu0 %267 }
  0x8a   :  { %1512 = vperm.xlu0 %1956, %v106_v34   ;;  %v2437_v46 = vpop.permute.xlu1 %272 }
  0x8b   :  { %1517 = vperm.xlu1 %1957, %v107_v35  }
  0x8d   :  { %v2445_v49 = vpop.permute.xlu0 %187 }
  0x8e   :  { %1259 = vperm.xlu0 %1956, %v94_v37   ;;  %v2447_v50 = vpop.permute.xlu1 %192 }
  0x8f   :  { %1522 = vperm.xlu1 %1957, %v108_v38  }
  0x91   :  { %v2455_v53 = vpop.permute.xlu0 %277 }
  0x92   :  { %1264 = vperm.xlu0 %1956, %v95_v41   ;;  %v2463_v56 = vpop.permute.xlu1 %282 }
  0x93   :  { %1527 = vperm.xlu1 %1957, %v109_v42  }
  0x95   :  { %v2471_v59 = vpop.permute.xlu0 %197 }
  0x96   :  { %1269 = vperm.xlu0 %1956, %v96_v44   ;;  %v2473_v60 = vpop.permute.xlu1 %202 }
  0x97   :  { %1532 = vperm.xlu1 %1957, %v110_v45  }
  0x99   :  { %v2487_v1 = vpop.permute.xlu0 %287 }
  0x9a   :  { %1274 = vperm.xlu0 %1956, %v97_v47   ;;  %v2495_v4 = vpop.permute.xlu1 %292 }
  0x9b   :  { %1537 = vperm.xlu1 %1957, %v111_v48  }
  0x9d   :  { %v208_v7 = vpop.permute.xlu0 %207 }
  0x9e   :  { %1279 = vperm.xlu0 %1956, %v98_v51   ;;  %v213_v8 = vpop.permute.xlu1 %212 }
  0x9f   :  { %1542 = vperm.xlu1 %1957, %v112_v52  }
  0xa1   :  { %v2509_v11 = vpop.permute.xlu0 %297 }
  0xa2   :  { %1284 = vperm.xlu0 %1956, %v99_v54   ;;  %v2517_v14 = vpop.permute.xlu1 %302 }
  0xa3   :  { %1547 = vperm.xlu1 %1957, %v113_v55  }
  0xa5   :  { %v218_v17 = vpop.permute.xlu0 %217 }
  0xa6   :  { %1289 = vperm.xlu0 %1956, %v100_v57   ;;  %v223_v18 = vpop.permute.xlu1 %222 }
  0xa7   :  { %1552 = vperm.xlu1 %1957, %v114_v58  }
  0xa9   :  { %v2525_v19 = vpop.permute.xlu0 %307 }
  0xaa   :  { %1294 = vperm.xlu0 %1956, %v101_v61   ;;  %v2527_v20 = vpop.permute.xlu1 %312 }
  0xab   :  { %1557 = vperm.xlu1 %1957, %v115_v62  }
  0xad   :  { %v228_v21 = vpop.permute.xlu0 %227 }
  0xae   :  { %1299 = vperm.xlu0 %1956, %v102_v2   ;;  %v233_v22 = vpop.permute.xlu1 %232 }
  0xaf   :  { %1562 = vperm.xlu1 %1957, %v116_v3  }
  0xb1   :  { %v2529_v23 = vpop.permute.xlu0 %317 }
  0xb2   :  { %1304 = vperm.xlu0 %1956, %v103_v5   ;;  %v2531_v24 = vpop.permute.xlu1 %322 }
  0xb3   :  { %1567 = vperm.xlu1 %1957, %v117_v6  }
  0xb5   :  { %v238_v25 = vpop.permute.xlu0 %237 }
  0xb6   :  { %1309 = vperm.xlu0 %1956, %v104_v9   ;;  %v2533_v26 = vpop.permute.xlu1 %242 }
  0xb7   :  { %1572 = vperm.xlu1 %1957, %v118_v10  }
  0xb9   :  { %v2535_v27 = vpop.permute.xlu0 %327 }
  0xba   :  { %1314 = vperm.xlu0 %1956, %v105_v12   ;;  %v2537_v28 = vpop.permute.xlu1 %332 }
  0xbb   :  { %1577 = vperm.xlu1 %1957, %v119_v13  }
  0xbd   :  { %v248_v29 = vpop.permute.xlu0 %247 }
  0xbe   :  { %1582 = vperm.xlu0 %1956, %v120_v15   ;;  %v253_v30 = vpop.permute.xlu1 %252 }
  0xbf   :  { %1587 = vperm.xlu1 %1957, %v121_v16  }
  0xc1   :  { %v2542_v42 = vpop.permute.xlu0 %337 }
  0xc2   :  { %v2545_v48 = vpop.permute.xlu1 %342 }
  0xc5   :  { %v2551_v58 = vpop.permute.xlu0 %942 }
  0xc6   :  { %v2554_v63 = vpop.permute.xlu1 %947 }
  0xc9   :  { %v2559_v10 = vpop.permute.xlu0 %347 }
  0xca   :  { %v2563_v15 = vpop.permute.xlu1 %352 }
  0xe3   :  { %v1891_v31 = vpop.f32.mrb[0].mxu0 }
  0xe4   :  { %v670_v32 = vadd.f32 %v1891_v31, %v2445_v49  ;;  %v661_v34 = vpop.f32.mrb[1].mxu0 }
  0xe5   :  { %v662_v35 = vadd.f32 %v661_v34, %v2411_v36  ;;  %v1892_v37 = vpop.f32.mrb[2].mxu0 }
  0xe6   :  { %v673_v38 = vadd.f32 %v1892_v37, %v2447_v50  ;;  %v664_v41 = vpop.f32.mrb[3].mxu0  ;;  %v854_v45 = vmax.f32 %v670_v32, 0.0  ;;  %v2565_v37 = vpop.permute.xlu0 %952 }
  0xe7   :  { %v665_v44 = vadd.f32 %v664_v41, %v2421_v40  ;;  %v852_v51 = vmax.f32 %v662_v35, 0.0 }
  0xe8   :  { %v855_v47 = vmax.f32 %v673_v38, 0.0 }
  0xe9   :  { %v853_v52 = vmax.f32 %v665_v44, 0.0 }
  0xea   :  { %v2547_v54 = vpack.c.bf16 %v855_v47, %v854_v45  ;;  %v2569_v45 = vpop.permute.xlu1 %957 }
  0xeb   :  { %v2549_v49 = vpack.c.bf16 %v853_v52, %v852_v51  ;;  %v1895_v55 = vpop.f32.mrb[4].mxu0 }
  0xec   :  { %v686_v36 = vadd.f32 %v1895_v55, %v208_v7  ;;  %v677_v57 = vpop.f32.mrb[5].mxu0 }
  0xed   :  { %v678_v50 = vadd.f32 %v677_v57, %v2471_v59  ;;  %v1896_v61 = vpop.f32.mrb[6].mxu0 }
  0xee   :  { %v689_v62 = vadd.f32 %v1896_v61, %v213_v8  ;;  %v680_v40 = vpop.f32.mrb[7].mxu0  ;;  %v858_v2 = vmax.f32 %v686_v36, 0.0 }
  0xef   :  { %v681_v0 = vadd.f32 %v680_v40, %v2473_v60  ;;  %v856_v5 = vmax.f32 %v678_v50, 0.0 }
  0xf0   :  { %v859_v3 = vmax.f32 %v689_v62, 0.0  ;;  %v2576_v62 = vpop.permute.xlu1 %362 }
  0xf1   :  { %v857_v6 = vmax.f32 %v681_v0, 0.0 }
  0xf2   :  { %v2557_v9 = vpack.c.bf16 %v859_v3, %v858_v2 }
  0xf3   :  { %v2561_v7 = vpack.c.bf16 %v857_v6, %v856_v5  ;;  %v1899_v12 = vpop.f32.mrb[8].mxu0 }
  0xf4   :  { %v702_v13 = vadd.f32 %v1899_v12, %v228_v21  ;;  %v693_v59 = vpop.f32.mrb[9].mxu0 }
  0xf5   :  { %v694_v8 = vadd.f32 %v693_v59, %v218_v17  ;;  %v1900_v16 = vpop.f32.mrb[10].mxu0  ;;  %v2587_v59 = vpop.permute.xlu1 %967 }
  0xf6   :  { %v705_v31 = vadd.f32 %v1900_v16, %v233_v22  ;;  %v696_v32 = vpop.f32.mrb[11].mxu0  ;;  %v862_v34 = vmax.f32 %v702_v13, 0.0 }
  0xf7   :  { %v697_v60 = vadd.f32 %v696_v32, %v223_v18  ;;  %v860_v38 = vmax.f32 %v694_v8, 0.0  ;;  %v2573_v18 = vpop.permute.xlu0 %357 }
  0xf8   :  { %v863_v35 = vmax.f32 %v705_v31, 0.0 }
  0xf9   :  { %v861_v41 = vmax.f32 %v697_v60, 0.0 }
  0xfa   :  { %v2567_v44 = vpack.c.bf16 %v863_v35, %v862_v34 }
  0xfb   :  { %v2571_v47 = vpack.c.bf16 %v861_v41, %v860_v38  ;;  %v1903_v21 = vpop.f32.mrb[12].mxu0 }
  0xfc   :  { %v718_v51 = vadd.f32 %v1903_v21, %v248_v29  ;;  %v709_v52 = vpop.f32.mrb[13].mxu0  ;;  %v2593_v21 = vpop.permute.xlu1 %372 }
  0xfd   :  { %v710_v17 = vadd.f32 %v709_v52, %v238_v25  ;;  %v1904_v55 = vpop.f32.mrb[14].mxu0 }
  0xfe   :  { %v721_v22 = vadd.f32 %v1904_v55, %v253_v30  ;;  %v712_v36 = vpop.f32.mrb[15].mxu0  ;;  %v866_v50 = vmax.f32 %v718_v51, 0.0  ;;  %v2583_v30 = vpop.permute.xlu0 %962 }
  0xff   :  { %v713_v57 = vadd.f32 %v712_v36, %v2533_v26  ;;  %v864_v40 = vmax.f32 %v710_v17, 0.0 }
 0x100   :  { %v867_v61 = vmax.f32 %v721_v22, 0.0 }
 0x101   :  { %v865_v0 = vmax.f32 %v713_v57, 0.0 }
 0x102   :  { %v2578_v2 = vpack.c.bf16 %v867_v61, %v866_v50  ;;  %v2590_v35 = vpop.permute.xlu0 %367 }
 0x103   :  { %v2580_v3 = vpack.c.bf16 %v865_v0, %v864_v40  ;;  %v1907_v29 = vpop.f32.mrb[16].mxu0 }
 0x104   :  { %v734_v25 = vadd.f32 %v1907_v29, %v2429_v43  ;;  %v725_v5 = vpop.f32.mrb[17].mxu0 }
 0x105   :  { %v726_v6 = vadd.f32 %v725_v5, %v2403_v33  ;;  %v1908_v12 = vpop.f32.mrb[18].mxu0 }
 0x106   :  { %v737_v26 = vadd.f32 %v1908_v12, %v2437_v46  ;;  %v728_v13 = vpop.f32.mrb[19].mxu0  ;;  %v870_v16 = vmax.f32 %v734_v25, 0.0  ;;  %v2600_v22 = vpop.permute.xlu0 %972 }
 0x107   :  { %v729_v8 = vadd.f32 %v728_v13, %v2419_v39  ;;  %v868_v32 = vmax.f32 %v726_v6, 0.0 }
 0x108   :  { %v871_v31 = vmax.f32 %v737_v26, 0.0 }
 0x109   :  { %v869_v60 = vmax.f32 %v729_v8, 0.0 }
 0x10a   :  { %v909_v34 = vpack.c.bf16 %v871_v31, %v870_v16 }
 0x10b   :  { %v908_v43 = vpack.c.bf16 %v869_v60, %v868_v32  ;;  %v1911_v38 = vpop.f32.mrb[20].mxu0 }
 0x10c   :  { %v750_v41 = vadd.f32 %v1911_v38, %v2487_v1  ;;  %v741_v33 = vpop.f32.mrb[21].mxu0 }
 0x10d   :  { %v742_v46 = vadd.f32 %v741_v33, %v2455_v53  ;;  %v1912_v51 = vpop.f32.mrb[22].mxu0  ;;  %1755 = vmatprep.subr.bf16.mxu0 %v908_v43  ;;  %1937 = vmatprep.subr.bf16.mxu1 %v908_v43 }
 0x10e   :  { %v753_v39 = vadd.f32 %v1912_v51, %v2495_v4  ;;  %v744_v52 = vpop.f32.mrb[23].mxu0  ;;  %1756 = vmatpush3.bf16.msra.mxu0 %v2549_v49  ;;  %1945 = vmatpush3.bf16.msra.mxu1 %v2549_v49  ;;  %v874_v1 = vmax.f32 %v750_v41, 0.0  ;;  %v2604_v4 = vpop.permute.xlu1 %977 }
 0x10f   :  { %v745_v17 = vadd.f32 %v744_v52, %v2463_v56  ;;  %1757 = vmatprep.subr.bf16.mxu0 %v909_v34  ;;  %1938 = vmatprep.subr.bf16.mxu1 %v909_v34  ;;  %v872_v36 = vmax.f32 %v742_v46, 0.0 }
 0x110   :  { %v875_v55 = vmax.f32 %v753_v39, 0.0 }
 0x111   :  { %v873_v53 = vmax.f32 %v745_v17, 0.0 }
 0x112   :  { %v911_v57 = vpack.c.bf16 %v875_v55, %v874_v1  ;;  %1758 = vmatpush3.bf16.msra.mxu0 %v2547_v54  ;;  %1946 = vmatpush3.bf16.msra.mxu1 %v2547_v54  ;;  %v2611_v54 = vpop.permute.xlu0 %377  ;;  %v2614_v12 = vpop.permute.xlu1 %382 }
 0x113   :  { %v910_v50 = vpack.c.bf16 %v873_v53, %v872_v36  ;;  %v1915_v61 = vpop.f32.mrb[24].mxu0 }
 0x114   :  { %v766_v49 = vadd.f32 %v1915_v61, %v2525_v19  ;;  %v757_v56 = vpop.f32.mrb[25].mxu0 }
 0x115   :  { %v758_v40 = vadd.f32 %v757_v56, %v2509_v11  ;;  %v1916_v0 = vpop.f32.mrb[26].mxu0  ;;  %1759 = vmatprep.subr.bf16.mxu0 %v910_v50  ;;  %1939 = vmatprep.subr.bf16.mxu1 %v910_v50  ;;  %v1985_v50 = vld [vmem:[%s2794_s2] ss:$8 sps:$4 sm:$0xff]  }
 0x116   :  { %v769_v29 = vadd.f32 %v1916_v0, %v2527_v20  ;;  %v760_v25 = vpop.f32.mrb[27].mxu0  ;;  %1760 = vmatpush3.bf16.msra.mxu0 %v2561_v7  ;;  %1947 = vmatpush3.bf16.msra.mxu1 %v2561_v7  ;;  %v878_v19 = vmax.f32 %v766_v49, 0.0  ;;  %v2619_v31 = vpop.permute.xlu0 %982 }
 0x117   :  { %v761_v5 = vadd.f32 %v760_v25, %v2517_v14  ;;  %1761 = vmatprep.subr.bf16.mxu0 %v911_v57  ;;  %1940 = vmatprep.subr.bf16.mxu1 %v911_v57  ;;  %v876_v11 = vmax.f32 %v758_v40, 0.0  ;;  %v1993_v40 = vld [vmem:[%s2794_s2 + $0x44] ss:$8 sps:$4 sm:$0xff]  }
 0x118   :  { %v879_v6 = vmax.f32 %v769_v29, 0.0 }
 0x119   :  { %v877_v26 = vmax.f32 %v761_v5, 0.0 }
 0x11a   :  { %v913_v13 = vpack.c.bf16 %v879_v6, %v878_v19  ;;  %1762 = vmatpush3.bf16.msra.mxu0 %v2557_v9  ;;  %1948 = vmatpush3.bf16.msra.mxu1 %v2557_v9  ;;  %v2625_v9 = vpop.permute.xlu1 %987 }
 0x11b   :  { %v912_v20 = vpack.c.bf16 %v877_v26, %v876_v11  ;;  %v1919_v8 = vpop.f32.mrb[28].mxu0 }
 0x11c   :  { %v782_v7 = vadd.f32 %v1919_v8, %v2535_v27  ;;  %v773_v16 = vpop.f32.mrb[29].mxu0 }
 0x11d   :  { %v774_v14 = vadd.f32 %v773_v16, %v2529_v23  ;;  %v1920_v32 = vpop.f32.mrb[30].mxu0  ;;  %1763 = vmatprep.subr.bf16.mxu0 %v912_v20  ;;  %1941 = vmatprep.subr.bf16.mxu1 %v912_v20  ;;  %v1999_v16 = vld [vmem:[%s2794_s2 + $0x54] ss:$8 sps:$4 sm:$0xff]  }
 0x11e   :  { %v785_v60 = vadd.f32 %v1920_v32, %v2537_v28  ;;  %v776_v34 = vpop.f32.mrb[31].mxu0  ;;  %1764 = vmatpush3.bf16.msra.mxu0 %v2571_v47  ;;  %1949 = vmatpush3.bf16.msra.mxu1 %v2571_v47  ;;  %v882_v27 = vmax.f32 %v782_v7, 0.0  ;;  %v388_v28 = vpop.permute.xlu0 %387 }
 0x11f   :  { %v777_v43 = vadd.f32 %v776_v34, %v2531_v24  ;;  %1765 = vmatprep.subr.bf16.mxu0 %v913_v13  ;;  %1942 = vmatprep.subr.bf16.mxu1 %v913_v13  ;;  %v880_v41 = vmax.f32 %v774_v14, 0.0  ;;  %v393_v52 = vpop.permute.xlu1 %392 }
 0x120   :  { %v883_v38 = vmax.f32 %v785_v60, 0.0 }
 0x121   :  { %v881_v23 = vmax.f32 %v777_v43, 0.0 }
 0x122   :  { %v915_v33 = vpack.c.bf16 %v883_v38, %v882_v27  ;;  %1766 = vmatpush3.bf16.msra.mxu0 %v2567_v44  ;;  %1950 = vmatpush3.bf16.msra.mxu1 %v2567_v44  ;;  %v2636_v53 = vpop.permute.xlu0 %992 }
 0x123   :  { %v914_v46 = vpack.c.bf16 %v881_v23, %v880_v41  ;;  %v1923_v51 = vpop.f32.mrb[32].mxu0 }
 0x124   :  { %v798_v47 = vadd.f32 %v1923_v51, %v2559_v10  ;;  %v789_v39 = vpop.f32.mrb[33].mxu0 }
 0x125   :  { %v790_v24 = vadd.f32 %v789_v39, %v2542_v42  ;;  %v1924_v17 = vpop.f32.mrb[34].mxu0  ;;  %1767 = vmatprep.subr.bf16.mxu0 %v914_v46  ;;  %1943 = vmatprep.subr.bf16.mxu1 %v914_v46 }
 0x126   :  { %v801_v1 = vadd.f32 %v1924_v17, %v2563_v15  ;;  %v792_v55 = vpop.f32.mrb[35].mxu0  ;;  %1768 = vmatpush3.bf16.msra.mxu0 %v2580_v3  ;;  %1951 = vmatpush3.bf16.msra.mxu1 %v2580_v3  ;;  %v886_v36 = vmax.f32 %v798_v47, 0.0  ;;  %v1988_v15 = vld [vmem:[%s2794_s2 + $0x30] ss:$8 sps:$4 sm:$0xff]   ;;  %v2651_v3 = vpop.permute.xlu1 %997  ;;  %v2003_v17 = vld [vmem:[%s2794_s2 + $0x64] ss:$8 sps:$4 sm:$0xff]  }
 0x127   :  { %v793_v44 = vadd.f32 %v792_v55, %v2545_v48  ;;  %1769 = vmatprep.subr.bf16.mxu0 %v915_v33  ;;  %1944 = vmatprep.subr.bf16.mxu1 %v915_v33  ;;  %v884_v57 = vmax.f32 %v790_v24, 0.0  ;;  %v1991_v48 = vld [vmem:[%s2794_s2 + $0x14] ss:$8 sps:$4 sm:$0xff]   ;;  %v398_v6 = vpop.permute.xlu0 %397  ;;  %v2001_v24 = vld [vmem:[%s2794_s2 + $0x20] ss:$8 sps:$4 sm:$0xff]  }
 0x128   :  { %v887_v10 = vmax.f32 %v801_v1, 0.0 }
 0x129   :  { %v885_v42 = vmax.f32 %v793_v44, 0.0 }
 0x12a   :  { %v2644_v61 = vpack.c.bf16 %v887_v10, %v886_v36  ;;  %1770 = vmatpush3.bf16.msra.mxu0 %v2578_v2  ;;  %1952 = vmatpush3.bf16.msra.mxu1 %v2578_v2  ;;  %v403_v20 = vpop.permute.xlu1 %402 }
 0x12b   :  { %v916_v49 = vpack.c.bf16 %v885_v42, %v884_v57  ;;  %v1927_v56 = vpop.f32.mrb[36].mxu0  ;;  %v2676_v43 = vpop.permute.xlu0 %1002 }
 0x12c   :  { %v814_v0 = vadd.f32 %v1927_v56, %v2590_v35  ;;  %v805_v29 = vpop.f32.mrb[37].mxu0 }
 0x12d   :  { %v806_v25 = vadd.f32 %v805_v29, %v2573_v18  ;;  %v1928_v5 = vpop.f32.mrb[38].mxu0  ;;  %1133 = vmatmul.mubr.bf16.vlgmr.msra.gmra.mrb[48].mxu0 %v1985_v50  ;;  %1157 = vmatmul.mubr.bf16.vlgmr.msra.gmra.mrb[0].mxu1 %v1988_v15  ;;  %v1995_v18 = vld [vmem:[%s2794_s2 + $0x10] ss:$8 sps:$4 sm:$0xff]   ;;  %v2005_v29 = vld [vmem:[%s2794_s2 + $0x60] ss:$8 sps:$4 sm:$0xff]  }
 0x12e   :  { %v817_v2 = vadd.f32 %v1928_v5, %v2593_v21  ;;  %1819 = vmatprep.subr.bf16.mxu1 %v916_v49  ;;  %v808_v19 = vpop.f32.mrb[39].mxu0  ;;  %1140 = vmatprep.mubr.bf16.mxu0 %v1991_v48  ;;  %v890_v26 = vmax.f32 %v814_v0, 0.0  ;;  %v1996_v21 = vld [vmem:[%s2794_s2 + $0x40] ss:$8 sps:$4 sm:$0xff]   ;;  %v2679_v33 = vpop.permute.xlu1 %1007  ;;  %v2006_v5 = vld [vmem:[%s2794_s2 + $0x74] ss:$8 sps:$4 sm:$0xff]  }
 0x12f   :  { %v809_v11 = vadd.f32 %v808_v19, %v2576_v62  ;;  %1164 = vmatprep.mubr.bf16.mxu1 %v1993_v40  ;;  %v888_v8 = vmax.f32 %v806_v25, 0.0  ;;  %v1997_v62 = vld [vmem:[%s2794_s2 + $0x24] ss:$8 sps:$4 sm:$0xff]   ;;  %v408_v1 = vpop.permute.xlu0 %407  ;;  %v2008_v19 = vld [vmem:[%s2794_s2 + $0x70] ss:$8 sps:$4 sm:$0xff]  }
 0x130   :  { %v891_v13 = vmax.f32 %v817_v2, 0.0 }
 0x131   :  { %v889_v35 = vmax.f32 %v809_v11, 0.0 }
 0x132   :  { %v2666_v7 = vpack.c.bf16 %v891_v13, %v890_v26  ;;  %v413_v10 = vpop.permute.xlu1 %412 }
 0x133   :  { %v2674_v14 = vpack.c.bf16 %v889_v35, %v888_v8  ;;  %v1931_v32 = vpop.f32.mrb[40].mxu0 }
 0x134   :  { %v830_v60 = vadd.f32 %v1931_v32, %v388_v28  ;;  %v821_v34 = vpop.f32.mrb[41].mxu0 }
 0x135   :  { %v822_v27 = vadd.f32 %v821_v34, %v2611_v54  ;;  %v1932_v38 = vpop.f32.mrb[42].mxu0  ;;  %1141 = vmatmul.mubr.bf16.gmra.mrb[52].mxu0 %v1995_v18  ;;  %1165 = vmatmul.mubr.bf16.gmra.mrb[4].mxu1 %v1996_v21  ;;  %v2002_v54 = vld [vmem:[%s2794_s2 + $0x50] ss:$8 sps:$4 sm:$0xff]  }
 0x136   :  { %v833_v41 = vadd.f32 %v1932_v38, %v393_v52  ;;  %v824_v23 = vpop.f32.mrb[43].mxu0  ;;  %1148 = vmatprep.mubr.bf16.mxu0 %v1997_v62  ;;  %1172 = vmatprep.mubr.bf16.mxu1 %v1999_v16  ;;  %v894_v51 = vmax.f32 %v830_v60, 0.0 }
 0x137   :  { %v825_v46 = vadd.f32 %v824_v23, %v2614_v12  ;;  %v892_v39 = vmax.f32 %v822_v27, 0.0 }
 0x138   :  { %v895_v47 = vmax.f32 %v833_v41, 0.0 }
 0x139   :  { %v893_v28 = vmax.f32 %v825_v46, 0.0 }
 0x13a   :  { %v2688_v52 = vpack.c.bf16 %v895_v47, %v894_v51 }
 0x13b   :  { %v2693_v12 = vpack.c.bf16 %v893_v28, %v892_v39  ;;  %v1935_v55 = vpop.f32.mrb[44].mxu0 }
 0x13c   :  { %v846_v44 = vadd.f32 %v1935_v55, %v408_v1  ;;  %v837_v36 = vpop.f32.mrb[45].mxu0 }
 0x13d   :  { %v838_v57 = vadd.f32 %v837_v36, %v398_v6  ;;  %v1936_v42 = vpop.f32.mrb[46].mxu0  ;;  %1149 = vmatmul.mubr.bf16.gmra.mrb[56].mxu0 %v2001_v24  ;;  %1173 = vmatmul.mubr.bf16.gmra.mrb[8].mxu1 %v2002_v54  ;;  %v2011_v6 = vld [vmem:[%s2795_s3 + $0x4] ss:$8 sps:$4 sm:$0xff]  }
 0x13e   :  { %v849_v50 = vadd.f32 %v1936_v42, %v413_v10  ;;  %v840_v15 = vpop.f32.mrb[47].mxu0  ;;  %1180 = vmatprep.mubr.bf16.mxu1 %v2003_v17  ;;  %v898_v49 = vmax.f32 %v846_v44, 0.0 }
 0x13f   :  { %v841_v48 = vadd.f32 %v840_v15, %v403_v20  ;;  %v896_v40 = vmax.f32 %v838_v57, 0.0 }
 0x140   :  { %v899_v56 = vmax.f32 %v849_v50, 0.0 }
 0x141   :  { %v897_v0 = vmax.f32 %v841_v48, 0.0 }
 0x142   :  { %v2698_v25 = vpack.c.bf16 %v899_v56, %v898_v49 }
 0x143   :  { %v2703_v2 = vpack.c.bf16 %v897_v0, %v896_v40 }
 0x145   :  { %1181 = vmatmul.mubr.bf16.gmra.mrb[12].mxu1 %v2005_v29 }
 0x146   :  { %1188 = vmatprep.mubr.bf16.mxu1 %v2006_v5 }
 0x14d   :  { %1189 = vmatmul.mubr.bf16.gmra.mrb[16].mxu1 %v2008_v19 }
 0x14e   :  { %1429 = vmatprep.mubr.bf16.mxu1 %v2011_v6 }
 0x200   :  { %v1771_v11 = vpop.f32.mrb[48].mxu0  ;;  %v1789_v26 = vpop.f32.mrb[0].mxu1 }
 0x201   :  { %v1772_v13 = vpop.f32.mrb[49].mxu0  ;;  %v1790_v20 = vpop.f32.mrb[1].mxu1 }
 0x202   :  { %v1773_v8 = vadd.f32 %v1772_v13, %v1771_v11  ;;  %v1791_v35 = vadd.f32 %v1790_v20, %v1789_v26  ;;  %v1774_v18 = vpop.f32.mrb[50].mxu0  ;;  %v1792_v21 = vpop.f32.mrb[2].mxu1 }
 0x203   :  { %v1775_v62 = vpop.f32.mrb[51].mxu0  ;;  %v1793_v16 = vpop.f32.mrb[3].mxu1 }
 0x204   :  { %v1135_v32 = vadd.f32 %v1773_v8, %v2551_v58  ;;  %v1159_v60 = vadd.f32 %v1791_v35, %v2600_v22  ;;  %v1776_v34 = vadd.f32 %v1775_v62, %v1774_v18  ;;  %v1794_v27 = vadd.f32 %v1793_v16, %v1792_v21 }
 0x206   :  { %v1138_v38 = vadd.f32 %v1776_v34, %v2554_v63  ;;  %v1162_v41 = vadd.f32 %v1794_v27, %v2604_v4  ;;  %v1197_v23 = vmax.f32 %v1135_v32, 0.0  ;;  %v1203_v46 = vmax.f32 %v1159_v60, 0.0 }
 0x208   :  { %v1198_v51 = vmax.f32 %v1138_v38, 0.0  ;;  %v1204_v47 = vmax.f32 %v1162_v41, 0.0  ;;  %v1777_v39 = vpop.f32.mrb[52].mxu0  ;;  %v1795_v28 = vpop.f32.mrb[4].mxu1 }
 0x209   :  { %v1778_v24 = vpop.f32.mrb[53].mxu0  ;;  %v1796_v54 = vpop.f32.mrb[5].mxu1 }
 0x20a   :  { %v1213_v17 = vpack.c.bf16 %v1198_v51, %v1197_v23  ;;  %v1216_v1 = vpack.c.bf16 %v1204_v47, %v1203_v46  ;;  %v1779_v55 = vadd.f32 %v1778_v24, %v1777_v39  ;;  %v1797_v58 = vadd.f32 %v1796_v54, %v1795_v28  ;;  %v1780_v44 = vpop.f32.mrb[54].mxu0  ;;  %v1798_v22 = vpop.f32.mrb[6].mxu1 }
 0x20b   :  { %v1781_v36 = vpop.f32.mrb[55].mxu0  ;;  %v1799_v10 = vpop.f32.mrb[7].mxu1 }
 0x20c   :  { %v1143_v63 = vadd.f32 %v1779_v55, %v2565_v37  ;;  %v1167_v4 = vadd.f32 %v1797_v58, %v2619_v31  ;;  %v1782_v57 = vadd.f32 %v1781_v36, %v1780_v44  ;;  %v1800_v42 = vadd.f32 %v1799_v10, %v1798_v22  ;;  %1820 = vmatpush3.bf16.msra.mxu1 %v1213_v17  ;;  %v1013_v17 = vpop.permute.xlu0 %1012  ;;  %v1018_v44 = vpop.permute.xlu1 %1017  ;;  %v2012_v36 = vld [vmem:[%s2795_s3 + $0x14] ss:$8 sps:$4 sm:$0xff]  }
 0x20d   :  { %1821 = vmatprep.subr.bf16.mxu1 %v2644_v61  ;;  %v2018_v10 = vld [vmem:[%s2795_s3 + $0x34] ss:$8 sps:$4 sm:$0xff]  }
 0x20e   :  { %v1146_v50 = vadd.f32 %v1782_v57, %v2569_v45  ;;  %v1170_v15 = vadd.f32 %v1800_v42, %v2625_v9  ;;  %v1199_v48 = vmax.f32 %v1143_v63, 0.0  ;;  %v1205_v49 = vmax.f32 %v1167_v4, 0.0  ;;  %v2020_v63 = vld [vmem:[%s2795_s3 + $0x30] ss:$8 sps:$4 sm:$0xff]   ;;  %v2021_v4 = vld [vmem:[%s2795_s3 + $0x44] ss:$8 sps:$4 sm:$0xff]  }
 0x20f   :  { %v2023_v57 = vld [vmem:[%s2795_s3 + $0x40] ss:$8 sps:$4 sm:$0xff]   ;;  %v2024_v42 = vld [vmem:[%s2795_s3 + $0x54] ss:$8 sps:$4 sm:$0xff]  }
 0x210   :  { %v1200_v56 = vmax.f32 %v1146_v50, 0.0  ;;  %v1206_v40 = vmax.f32 %v1170_v15, 0.0  ;;  %v1783_v0 = vpop.f32.mrb[56].mxu0  ;;  %v1801_v29 = vpop.f32.mrb[8].mxu1  ;;  %v2026_v50 = vld [vmem:[%s2795_s3 + $0x50] ss:$8 sps:$4 sm:$0xff]  }
 0x211   :  { %v1784_v5 = vpop.f32.mrb[57].mxu0  ;;  %v1802_v19 = vpop.f32.mrb[9].mxu1  ;;  %v2027_v15 = vld [vmem:[%s2795_s3 + $0x64] ss:$8 sps:$4 sm:$0xff]  }
 0x212   :  { %v1214_v37 = vpack.c.bf16 %v1200_v56, %v1199_v48  ;;  %v1217_v6 = vpack.c.bf16 %v1206_v40, %v1205_v49  ;;  %v1785_v31 = vadd.f32 %v1784_v5, %v1783_v0  ;;  %v1803_v11 = vadd.f32 %v1802_v19, %v1801_v29  ;;  %v1786_v26 = vpop.f32.mrb[58].mxu0  ;;  %v1804_v13 = vpop.f32.mrb[10].mxu1  ;;  %v2029_v48 = vld [vmem:[%s2795_s3 + $0x60] ss:$8 sps:$4 sm:$0xff]   ;;  %v2030_v49 = vld [vmem:[%s2795_s3 + $0x74] ss:$8 sps:$4 sm:$0xff]  }
 0x213   :  { %v1787_v20 = vpop.f32.mrb[59].mxu0  ;;  %v1805_v61 = vpop.f32.mrb[11].mxu1  ;;  %v2032_v56 = vld [vmem:[%s2795_s3 + $0x70] ss:$8 sps:$4 sm:$0xff]  }
 0x214   :  { %v1151_v45 = vadd.f32 %v1785_v31, %v2583_v30  ;;  %v1175_v9 = vadd.f32 %v1803_v11, %v2636_v53  ;;  %v1788_v8 = vadd.f32 %v1787_v20, %v1786_v26  ;;  %v1806_v35 = vadd.f32 %v1805_v61, %v1804_v13  ;;  %1822 = vmatpush3.bf16.msra.mxu1 %v1214_v37  ;;  %v1240_v40 = vpop.permute.xlu0 %1239  ;;  %v1245_v0 = vpop.permute.xlu1 %1244 }
 0x215   :  { %1823 = vmatprep.subr.bf16.mxu1 %v2674_v14 }
 0x216   :  { %v1154_v18 = vadd.f32 %v1788_v8, %v2587_v59  ;;  %v1178_v21 = vadd.f32 %v1806_v35, %v2651_v3  ;;  %v1201_v62 = vmax.f32 %v1151_v45, 0.0  ;;  %v1207_v16 = vmax.f32 %v1175_v9, 0.0 }
 0x218   :  { %v1202_v32 = vmax.f32 %v1154_v18, 0.0  ;;  %v1208_v60 = vmax.f32 %v1178_v21, 0.0  ;;  %v1807_v34 = vpop.f32.mrb[12].mxu1  ;;  %v1250_v29 = vpop.permute.xlu0 %1249 }
 0x219   :  { %v1808_v27 = vpop.f32.mrb[13].mxu1  ;;  %v1255_v5 = vpop.permute.xlu1 %1254 }
 0x21a   :  { %v1215_v38 = vpack.c.bf16 %v1202_v32, %v1201_v62  ;;  %v1218_v41 = vpack.c.bf16 %v1208_v60, %v1207_v16  ;;  %v1809_v30 = vadd.f32 %v1808_v27, %v1807_v34  ;;  %v1810_v23 = vpop.f32.mrb[14].mxu1 }
 0x21b   :  { %v1811_v53 = vpop.f32.mrb[15].mxu1 }
 0x21c   :  { %v1183_v46 = vadd.f32 %v1809_v30, %v2676_v43  ;;  %v1812_v51 = vadd.f32 %v1811_v53, %v1810_v23  ;;  %1824 = vmatpush3.bf16.msra.mxu1 %v1215_v38  ;;  %v1513_v19 = vpop.permute.xlu0 %1512 }
 0x21d   :  { %1825 = vmatprep.subr.bf16.mxu1 %v2666_v7  ;;  %v1518_v37 = vpop.permute.xlu1 %1517 }
 0x21e   :  { %v1186_v59 = vadd.f32 %v1812_v51, %v2679_v33  ;;  %v1209_v3 = vmax.f32 %v1183_v46, 0.0 }
 0x220   :  { %v1210_v14 = vmax.f32 %v1186_v59, 0.0  ;;  %v1813_v47 = vpop.f32.mrb[16].mxu1  ;;  %1826 = vmatpush3.bf16.msra.mxu1 %v1216_v1 }
 0x221   :  { %v1814_v39 = vpop.f32.mrb[17].mxu1  ;;  %1827 = vmatprep.subr.bf16.mxu1 %v2693_v12  ;;  %v2009_v12 = vld [vmem:[%s2795_s3] ss:$8 sps:$4 sm:$0xff]   ;;  %v1523_v31 = vpop.permute.xlu1 %1522 }
 0x222   :  { %v1219_v28 = vpack.c.bf16 %v1210_v14, %v1209_v3  ;;  %v1815_v24 = vadd.f32 %v1814_v39, %v1813_v47  ;;  %v1816_v54 = vpop.f32.mrb[18].mxu1 }
 0x223   :  { %v1817_v55 = vpop.f32.mrb[19].mxu1 }
 0x224   :  { %v1191_v58 = vadd.f32 %v1815_v24, %v1013_v17  ;;  %v1818_v43 = vadd.f32 %v1817_v55, %v1816_v54  ;;  %1828 = vmatpush3.bf16.msra.mxu1 %v1217_v6  ;;  %v1260_v6 = vpop.permute.xlu0 %1259 }
 0x225   :  { %1829 = vmatprep.subr.bf16.mxu1 %v2688_v52  ;;  %v2014_v52 = vld [vmem:[%s2795_s3 + $0x10] ss:$8 sps:$4 sm:$0xff]   ;;  %v1528_v26 = vpop.permute.xlu1 %1527 }
 0x226   :  { %v1194_v7 = vadd.f32 %v1818_v43, %v1018_v44  ;;  %v1211_v33 = vmax.f32 %v1191_v58, 0.0 }
 0x228   :  { %v1212_v22 = vmax.f32 %v1194_v7, 0.0  ;;  %1830 = vmatpush3.bf16.msra.mxu1 %v1218_v41  ;;  %v1265_v11 = vpop.permute.xlu0 %1264 }
 0x229   :  { %1831 = vmatprep.subr.bf16.mxu1 %v2703_v2  ;;  %v2015_v2 = vld [vmem:[%s2795_s3 + $0x24] ss:$8 sps:$4 sm:$0xff]   ;;  %v1533_v8 = vpop.permute.xlu1 %1532 }
 0x22a   :  { %v1220_v1 = vpack.c.bf16 %v1212_v22, %v1211_v33 }
 0x22c   :  { %1832 = vmatpush3.bf16.msra.mxu1 %v1219_v28  ;;  %v1270_v61 = vpop.permute.xlu0 %1269 }
 0x22d   :  { %1833 = vmatprep.subr.bf16.mxu1 %v2698_v25  ;;  %v2017_v25 = vld [vmem:[%s2795_s3 + $0x20] ss:$8 sps:$4 sm:$0xff]   ;;  %v1538_v27 = vpop.permute.xlu1 %1537 }
 0x230   :  { %1834 = vmatpush3.bf16.msra.mxu1 %v1220_v1  ;;  %v1275_v32 = vpop.permute.xlu0 %1274 }
 0x231   :  { %v1543_v28 = vpop.permute.xlu1 %1542 }
 0x233   :  { %1430 = vmatmul.mubr.bf16.vlgmr.msra.gmra.mrb[20].mxu1 %v2009_v12 }
 0x234   :  { %1437 = vmatprep.mubr.bf16.mxu1 %v2012_v36  ;;  %v1280_v14 = vpop.permute.xlu0 %1279 }
 0x238   :  { %v1285_v22 = vpop.permute.xlu0 %1284 }
 0x23b   :  { %1438 = vmatmul.mubr.bf16.gmra.mrb[24].mxu1 %v2014_v52  ;;  %v1548_v52 = vpop.permute.xlu1 %1547 }
 0x23c   :  { %1445 = vmatprep.mubr.bf16.mxu1 %v2015_v2 }
 0x243   :  { %1446 = vmatmul.mubr.bf16.gmra.mrb[28].mxu1 %v2017_v25 }
 0x244   :  { %1453 = vmatprep.mubr.bf16.mxu1 %v2018_v10 }
 0x24b   :  { %1454 = vmatmul.mubr.bf16.gmra.mrb[32].mxu1 %v2020_v63 }
 0x24c   :  { %1461 = vmatprep.mubr.bf16.mxu1 %v2021_v4 }
 0x253   :  { %1462 = vmatmul.mubr.bf16.gmra.mrb[36].mxu1 %v2023_v57 }
 0x254   :  { %1469 = vmatprep.mubr.bf16.mxu1 %v2024_v42  ;;  %v1290_v42 = vpop.permute.xlu0 %1289 }
 0x25b   :  { %1470 = vmatmul.mubr.bf16.gmra.mrb[40].mxu1 %v2026_v50 }
 0x25c   :  { %1477 = vmatprep.mubr.bf16.mxu1 %v2027_v15 }
 0x263   :  { %1478 = vmatmul.mubr.bf16.gmra.mrb[44].mxu1 %v2029_v48 }
 0x264   :  { %1485 = vmatprep.mubr.bf16.mxu1 %v2030_v49 }
 0x26b   :  { %1486 = vmatmul.mubr.bf16.gmra.mrb[48].mxu1 %v2032_v56  ;;  %v1553_v56 = vpop.permute.xlu1 %1552 }
 0x306   :  { %v1835_v13 = vpop.f32.mrb[20].mxu1 }
 0x307   :  { %v1836_v20 = vpop.f32.mrb[21].mxu1 }
 0x308   :  { %v1837_v45 = vadd.f32 %v1836_v20, %v1835_v13  ;;  %v1838_v9 = vpop.f32.mrb[22].mxu1  ;;  %v1558_v13 = vpop.permute.xlu1 %1557 }
 0x309   :  { %v1839_v35 = vpop.f32.mrb[23].mxu1 }
 0x30a   :  { %v1432_v18 = vadd.f32 %v1837_v45, %v1240_v40  ;;  %v1840_v21 = vadd.f32 %v1839_v35, %v1838_v9 }
 0x30c   :  { %v1494_v62 = vmax.f32 %v1432_v18, 0.0  ;;  %v1435_v16 = vadd.f32 %v1840_v21, %v1245_v0 }
 0x30e   :  { %v1495_v60 = vmax.f32 %v1435_v16, 0.0  ;;  %v1841_v34 = vpop.f32.mrb[24].mxu1  ;;  %v1590_v41 = vmul.f32 %v1513_v19, %v1494_v62 }
 0x30f   :  { %v1842_v38 = vpop.f32.mrb[25].mxu1 }
 0x310   :  { %v1591_v30 = vmul.f32 %v1518_v37, %v1495_v60  ;;  %v1843_v23 = vadd.f32 %v1842_v38, %v1841_v34  ;;  %v1844_v53 = vpop.f32.mrb[26].mxu1 }
 0x311   :  { %v1845_v46 = vpop.f32.mrb[27].mxu1 }
 0x312   :  { %v1606_v51 = vadd.f32 %v1591_v30, %v1590_v41  ;;  %v1440_v59 = vadd.f32 %v1843_v23, %v1250_v29  ;;  %v1846_v3 = vadd.f32 %v1845_v46, %v1844_v53 }
 0x314   :  { %v1496_v47 = vmax.f32 %v1440_v59, 0.0  ;;  %v1443_v39 = vadd.f32 %v1846_v3, %v1255_v5 }
 0x316   :  { %v1592_v24 = vmul.f32 %v1523_v31, %v1496_v47  ;;  %v1497_v54 = vmax.f32 %v1443_v39, 0.0  ;;  %v1847_v17 = vpop.f32.mrb[28].mxu1 }
 0x317   :  { %v1848_v55 = vpop.f32.mrb[29].mxu1 }
 0x318   :  { %v1607_v58 = vadd.f32 %v1606_v51, %v1592_v24  ;;  %v1593_v43 = vmul.f32 %v1528_v26, %v1497_v54  ;;  %v1849_v44 = vadd.f32 %v1848_v55, %v1847_v17  ;;  %v1850_v7 = vpop.f32.mrb[30].mxu1 }
 0x319   :  { %v1851_v33 = vpop.f32.mrb[31].mxu1 }
 0x31a   :  { %v1608_v1 = vadd.f32 %v1607_v58, %v1593_v43  ;;  %v1448_v12 = vadd.f32 %v1849_v44, %v1260_v6  ;;  %v1852_v36 = vadd.f32 %v1851_v33, %v1850_v7  ;;  %v1295_v6 = vpop.permute.xlu0 %1294 }
 0x31c   :  { %v1498_v2 = vmax.f32 %v1448_v12, 0.0  ;;  %v1451_v25 = vadd.f32 %v1852_v36, %v1265_v11 }
 0x31e   :  { %v1594_v10 = vmul.f32 %v1533_v8, %v1498_v2  ;;  %v1499_v63 = vmax.f32 %v1451_v25, 0.0  ;;  %v1853_v4 = vpop.f32.mrb[32].mxu1  ;;  %v1300_v60 = vpop.permute.xlu0 %1299 }
 0x31f   :  { %v1854_v57 = vpop.f32.mrb[33].mxu1 }
 0x320   :  { %v1609_v50 = vadd.f32 %v1608_v1, %v1594_v10  ;;  %v1595_v15 = vmul.f32 %v1538_v27, %v1499_v63  ;;  %v1855_v48 = vadd.f32 %v1854_v57, %v1853_v4  ;;  %v1856_v49 = vpop.f32.mrb[34].mxu1  ;;  %v1563_v27 = vpop.permute.xlu1 %1562 }
 0x321   :  { %v1857_v40 = vpop.f32.mrb[35].mxu1 }
 0x322   :  { %v1610_v0 = vadd.f32 %v1609_v50, %v1595_v15  ;;  %v1456_v29 = vadd.f32 %v1855_v48, %v1270_v61  ;;  %v1858_v5 = vadd.f32 %v1857_v40, %v1856_v49  ;;  %v1305_v3 = vpop.permute.xlu0 %1304 }
 0x324   :  { %v1500_v19 = vmax.f32 %v1456_v29, 0.0  ;;  %v1459_v37 = vadd.f32 %v1858_v5, %v1275_v32  ;;  %v1568_v24 = vpop.permute.xlu1 %1567 }
 0x326   :  { %v1596_v31 = vmul.f32 %v1543_v28, %v1500_v19  ;;  %v1501_v26 = vmax.f32 %v1459_v37, 0.0  ;;  %v1859_v11 = vpop.f32.mrb[36].mxu1  ;;  %v1310_v44 = vpop.permute.xlu0 %1309 }
 0x327   :  { %v1860_v20 = vpop.f32.mrb[37].mxu1 }
 0x328   :  { %v1611_v45 = vadd.f32 %v1610_v0, %v1596_v31  ;;  %v1597_v9 = vmul.f32 %v1548_v52, %v1501_v26  ;;  %v1861_v8 = vadd.f32 %v1860_v20, %v1859_v11  ;;  %v1862_v35 = vpop.f32.mrb[38].mxu1  ;;  %v1573_v12 = vpop.permute.xlu1 %1572 }
 0x329   :  { %v1863_v18 = vpop.f32.mrb[39].mxu1 }
 0x32a   :  { %v1612_v21 = vadd.f32 %v1611_v45, %v1597_v9  ;;  %v1464_v62 = vadd.f32 %v1861_v8, %v1280_v14  ;;  %v1864_v16 = vadd.f32 %v1863_v18, %v1862_v35  ;;  %v1315_v4 = vpop.permute.xlu0 %1314 }
 0x32c   :  { %v1502_v34 = vmax.f32 %v1464_v62, 0.0  ;;  %v1467_v61 = vadd.f32 %v1864_v16, %v1285_v22  ;;  %v1578_v15 = vpop.permute.xlu1 %1577 }
 0x32e   :  { %v1598_v38 = vmul.f32 %v1553_v56, %v1502_v34  ;;  %v1503_v32 = vmax.f32 %v1467_v61, 0.0  ;;  %v1865_v41 = vpop.f32.mrb[40].mxu1  ;;  %v1583_v26 = vpop.permute.xlu0 %1582 }
 0x32f   :  { %v1866_v30 = vpop.f32.mrb[41].mxu1 }
 0x330   :  { %v1613_v23 = vadd.f32 %v1612_v21, %v1598_v38  ;;  %v1599_v53 = vmul.f32 %v1558_v13, %v1503_v32  ;;  %v1867_v46 = vadd.f32 %v1866_v30, %v1865_v41  ;;  %v1868_v51 = vpop.f32.mrb[42].mxu1  ;;  %v1588_v20 = vpop.permute.xlu1 %1587 }
 0x331   :  { %v1869_v59 = vpop.f32.mrb[43].mxu1 }
 0x332   :  { %v1614_v47 = vadd.f32 %v1613_v23, %v1599_v53  ;;  %v1472_v39 = vadd.f32 %v1867_v46, %v1290_v42  ;;  %v1870_v28 = vadd.f32 %v1869_v59, %v1868_v51 }
 0x334   :  { %v1504_v14 = vmax.f32 %v1472_v39, 0.0  ;;  %v1475_v54 = vadd.f32 %v1870_v28, %v1295_v6 }
 0x336   :  { %v1600_v17 = vmul.f32 %v1563_v27, %v1504_v14  ;;  %v1505_v55 = vmax.f32 %v1475_v54, 0.0  ;;  %v1871_v58 = vpop.f32.mrb[44].mxu1 }
 0x337   :  { %v1872_v43 = vpop.f32.mrb[45].mxu1 }
 0x338   :  { %v1615_v7 = vadd.f32 %v1614_v47, %v1600_v17  ;;  %v1601_v33 = vmul.f32 %v1568_v24, %v1505_v55  ;;  %v1873_v22 = vadd.f32 %v1872_v43, %v1871_v58  ;;  %v1874_v1 = vpop.f32.mrb[46].mxu1 }
 0x339   :  { %v1875_v36 = vpop.f32.mrb[47].mxu1 }
 0x33a   :  { %v1616_v52 = vadd.f32 %v1615_v7, %v1601_v33  ;;  %v1480_v2 = vadd.f32 %v1873_v22, %v1300_v60  ;;  %v1876_v25 = vadd.f32 %v1875_v36, %v1874_v1  ;;  %v1628_v60 = vstv %s2797_s5 }
 0x33c   :  { %v1506_v10 = vmax.f32 %v1480_v2, 0.0  ;;  %v1483_v63 = vadd.f32 %v1876_v25, %v1305_v3 }
 0x33e   :  { %v1602_v57 = vmul.f32 %v1573_v12, %v1506_v10  ;;  %v1507_v42 = vmax.f32 %v1483_v63, 0.0  ;;  %v1877_v50 = vpop.f32.mrb[48].mxu1 }
 0x33f   :  { %v1878_v48 = vpop.f32.mrb[49].mxu1 }
 0x340   :  { %v1617_v49 = vadd.f32 %v1616_v52, %v1602_v57  ;;  %v1603_v56 = vmul.f32 %v1578_v15, %v1507_v42  ;;  %v1879_v40 = vadd.f32 %v1878_v48, %v1877_v50  ;;  %v1880_v0 = vpop.f32.mrb[50].mxu1 }
 0x341   :  { %v1881_v29 = vpop.f32.mrb[51].mxu1 }
 0x342   :  { %v1618_v5 = vadd.f32 %v1617_v49, %v1603_v56  ;;  %v1488_v19 = vadd.f32 %v1879_v40, %v1310_v44  ;;  %v1882_v37 = vadd.f32 %v1881_v29, %v1880_v0 }
 0x344   :  { %v1508_v6 = vmax.f32 %v1488_v19, 0.0  ;;  %v1491_v31 = vadd.f32 %v1882_v37, %v1315_v4 }
 0x346   :  { %v1604_v11 = vmul.f32 %v1583_v26, %v1508_v6  ;;  %v1509_v13 = vmax.f32 %v1491_v31, 0.0 }
 0x348   :  { %v1619_v45 = vadd.f32 %v1618_v5, %v1604_v11  ;;  %v1605_v9 = vmul.f32 %v1588_v20, %v1509_v13 }
 0x34a   :  { %v1620_v8 = vadd.f32 %v1619_v45, %v1605_v9 }
 0x34c   :  { %v1621_v35 = vrot.slane %v1620_v8, 4 }
 0x34e   :  { %v1622_v18 = vadd.f32 %v1621_v35, %v1620_v8 }
 0x350   :  { %v1623_v21 = vrot.slane %v1622_v18, 2 }
 0x352   :  { %v1624_v62 = vadd.f32 %v1623_v21, %v1622_v18 }
 0x354   :  { %v1625_v16 = vrot.slane %v1624_v62, 1 }
 0x356   :  { %v1626_v34 = vadd.f32 %v1625_v16, %v1624_v62 }
 0x358   :  { %v1629_v61 = vadd.f32 %v1628_v60, %v1626_v34 }
 0x35a   :  { %1630 = vst [vmem:[#allocation3] sm:$0x1] %v1629_v61 }
 0x35b   :  { %2044 = shalt.err (!%p2041_p4)
}
 0x35c   :  { %s2045_s27 = scalar_lea.hbm %s2798_s6, 16 }
 0x35d   :  { %p2046_p5 = scmp.ne.s32.totalorder %s2798_s6, %s2045_s27  ;;  %p2049_p6 = scmp.lt.u32.totalorder %s2045_s27, %s2798_s6 }
 0x35f   :  { %p2051_p7 = pnand %p2049_p6, %p2046_p5 }
 0x361   :  { %2054 = shalt.err (!%p2051_p7)
}
 0x362   :  { %1640 = dma.vmem_to_hbm [thread:$0]  %s1638_s22, 16, %s2798_s6, [#allocation4]  }
 0x363   :  { %2055 = dma.done.wait [#allocation4], 16  }
 0x364   :  { %2056 = vsyncadd [#allocation4], 4294967280 }
 0x365   :  { %1644 = vsyncpa [#allocation4], 1 }

</bundles_post_ra>
